<compile_context>
chip_gen: v6e
topology: v6e:2x2x1
jax: 0.10.0
libtpu: 0.0.40
codegen_flags: <defaults>
</compile_context>

<pallas_src>
import math

import jax
import jax.numpy as jnp
import numpy as np
from jax.experimental import pallas as pl
from jax.experimental.pallas import tpu as pltpu

# ----- config (consistent with cfg['emb_dim'], cfg['hidden_dim']) -----
B = 2              # batch
T = 8              # sequence length
D = 32             # emb_dim
NUM_HEADS = 4
HEAD_DIM = D // NUM_HEADS
HALF = HEAD_DIM // 2
HIDDEN = 64        # hidden_dim of the SwiGLU FFN
BT = B * T
EPS = 1e-5         # nn.LayerNorm default eps
NEG_INF = -1e30

# ----- f32 side-slab row layout (one segment per aligned row) -----
ROW_BPROJ = BT          # fused projection bias (1, 256)
ROW_B12 = BT + 1        # gate|up bias         (1, 128)
ROW_BO = BT + 2         # out-proj bias        (1, 32)
ROW_B3 = BT + 3         # down-proj bias       (1, 32)
ROW_LN1G = BT + 4
ROW_LN1B = BT + 5
ROW_LN2G = BT + 6
ROW_LN2B = BT + 7
F_ROWS = BT + 8         # 24
F_COLS = 8 * D          # 256 (width of the fused projection)

# ----- bf16 weight-slab layout -----
W_ROWS = 2 * D + HIDDEN   # 128: [fused proj rows | w12 rows | w3 rows]
W_COLS = 8 * D            # 256


def _layernorm(x, gamma, beta):
    mean = jnp.mean(x, axis=-1, keepdims=True)
    var = jnp.mean((x - mean) ** 2, axis=-1, keepdims=True)
    return (x - mean) * jax.lax.rsqrt(var + EPS) * gamma + beta


def gpt2_block_kernel(x_ref, f_ref, w_ref, o_ref):
    x = x_ref[...]                               # (BT, D) f32
    f = f_ref[...]                               # (F_ROWS, 256) f32
    w = w_ref[...]                               # (W_ROWS, 256) bf16

    # ---- unpack f32 side slab (aligned row / vreg-boundary slices) ----
    cs = f[0:BT, 0:4 * D]                        # (BT, 128) = [cos|cos|sin|sin]
    mask_add = f[0:BT, 4 * D:4 * D + BT]         # (BT, BT) additive mask
    b_proj = f[ROW_BPROJ:ROW_BPROJ + 1, :]       # (1, 256)
    b_12 = f[ROW_B12:ROW_B12 + 1, 0:2 * HIDDEN]  # (1, 128)
    b_o = f[ROW_BO:ROW_BO + 1, 0:D]              # (1, 32)
    b_3 = f[ROW_B3:ROW_B3 + 1, 0:D]              # (1, 32)
    ln1_g = f[ROW_LN1G:ROW_LN1G + 1, 0:D]
    ln1_b = f[ROW_LN1B:ROW_LN1B + 1, 0:D]
    ln2_g = f[ROW_LN2G:ROW_LN2G + 1, 0:D]
    ln2_b = f[ROW_LN2B:ROW_LN2B + 1, 0:D]

    # ---- unpack bf16 weight slab ----
    w_proj = w[0:D, :]                           # (32, 256) fused projection
    w_12 = w[D:2 * D, 0:2 * HIDDEN]              # (32, 128) gate|up
    w_3 = w[2 * D:2 * D + HIDDEN, 0:D]           # (64, 32)  down

    # ---------------- LayerNorm 1 ----------------
    h = _layernorm(x, ln1_g, ln1_b)

    # ---- fused projection: [q*s | k | (q*s)@P | k@P | vo0 | vo1 | vo2 | vo3] ----
    proj = jnp.dot(h.astype(jnp.bfloat16), w_proj,
                   preferred_element_type=jnp.float32) + b_proj       # (BT, 256)

    # RoPE = one VPU multiply + one add (rotation folded into the weights)
    roped = proj[:, 0:4 * D] * cs                                     # (BT, 128)
    qk = roped[:, 0:2 * D] + roped[:, 2 * D:4 * D]                    # (BT, 64)
    qb = qk[:, 0:D].astype(jnp.bfloat16)                              # roped, scaled q
    kb = qk[:, D:2 * D].astype(jnp.bfloat16)                          # roped k
    vob = proj[:, 4 * D:8 * D].astype(jnp.bfloat16)                   # (BT, 128) [vo_h]

    # ---- attention: 4-way static unroll, 2 MXU pushes per head ----
    dn = (((1,), (1,)), ((), ()))                # contract last dim of both (trans_b)
    attn = jnp.zeros((BT, D), jnp.float32)
    for hd in range(NUM_HEADS):
        sl = slice(hd * HEAD_DIM, (hd + 1) * HEAD_DIM)
        s = jax.lax.dot_general(qb[:, sl], kb[:, sl], dn,
                                preferred_element_type=jnp.float32)   # (BT, BT)
        s = s + mask_add                         # causal + batch-block
        s = s - jnp.max(s, axis=-1, keepdims=True)
        p = jnp.exp(s)
        p = p * pl.reciprocal(jnp.sum(p, axis=-1, keepdims=True), approx=True)
        attn = attn + jnp.dot(p.astype(jnp.bfloat16),
                              vob[:, hd * D:(hd + 1) * D],
                              preferred_element_type=jnp.float32)     # (BT, D)
    x1 = x + attn + b_o                          # residual 1 (+ out-proj bias)

    # ---- LayerNorm 2 + fused SwiGLU FFN ----
    h2 = _layernorm(x1, ln2_g, ln2_b)
    gu = jnp.dot(h2.astype(jnp.bfloat16), w_12,
                 preferred_element_type=jnp.float32) + b_12           # (BT, 128)
    g = gu[:, 0:HIDDEN]
    u = gu[:, HIDDEN:2 * HIDDEN]
    act = (g * jax.nn.sigmoid(g)) * u                                 # SiLU(gate)*up
    ffn = jnp.dot(act.astype(jnp.bfloat16), w_3,
                  preferred_element_type=jnp.float32) + b_3

    o_ref[...] = x1 + ffn                        # residual 2


def _rope_perm_matrix():
    # rot = x @ P  implements per-head rotate-half: rot = [-x2, x1]
    p = np.zeros((D, D), np.float32)
    for h in range(NUM_HEADS):
        base = h * HEAD_DIM
        for j in range(HALF):
            p[base + j + HALF, base + j] = -1.0   # first half gets -x2
            p[base + j, base + j + HALF] = 1.0    # second half gets +x1
    return jnp.asarray(p)


def gpt2_transformer_block(x, mask, cos, sin, params):
    (ln1_g, ln1_b, wq, bq, wk, bk, wv, bv, wo, bo,
     ln2_g, ln2_b, w1, b1, w2, b2, w3, b3) = params

    Bx, Tx, Dx = x.shape
    assert Bx * Tx == BT and Dx == D
    scale = 1.0 / math.sqrt(HEAD_DIM)
    x2d = x.reshape(Bx * Tx, Dx)

    # ---- wrapper-side fusions (one-time, plain XLA, exact in f32) ----
    rope_p = _rope_perm_matrix()
    wq_s, bq_s = wq * scale, bq * scale
    wvo = [wv[:, h * HEAD_DIM:(h + 1) * HEAD_DIM]
           @ wo[h * HEAD_DIM:(h + 1) * HEAD_DIM, :] for h in range(NUM_HEADS)]
    bvo = [bv[:, h * HEAD_DIM:(h + 1) * HEAD_DIM]
           @ wo[h * HEAD_DIM:(h + 1) * HEAD_DIM, :] for h in range(NUM_HEADS)]
    w_proj = jnp.concatenate([wq_s, wk, wq_s @ rope_p, wk @ rope_p] + wvo, axis=1)
    b_proj = jnp.concatenate([bq_s, bk, bq_s @ rope_p, bk @ rope_p] + bvo, axis=1)
    w12 = jnp.concatenate([w1, w2], axis=1)        # (D, 128) lane-dense gate|up
    b12 = jnp.concatenate([b1, b2], axis=1)        # (1, 128)

    # ---- bf16 weight slab (one DMA descriptor) ----
    w_slab = jnp.zeros((W_ROWS, W_COLS), jnp.bfloat16)
    w_slab = w_slab.at[0:D, :].set(w_proj.astype(jnp.bfloat16))
    w_slab = w_slab.at[D:2 * D, 0:2 * HIDDEN].set(w12.astype(jnp.bfloat16))
    w_slab = w_slab.at[2 * D:2 * D + HIDDEN, 0:D].set(w3.astype(jnp.bfloat16))

    # ---- f32 side slab (one DMA descriptor) ----
    cos_full = jnp.tile(cos, (Bx, NUM_HEADS)).astype(jnp.float32)      # (BT, D)
    sin_full = jnp.tile(sin, (Bx, NUM_HEADS)).astype(jnp.float32)
    cs = jnp.concatenate([cos_full, cos_full, sin_full, sin_full], axis=1)  # (BT, 128)

    # block-diagonal additive mask: causal inside each batch, -inf across batches
    in_block = jnp.where(mask > 0.5, NEG_INF, 0.0).astype(jnp.float32)  # (T, T)
    batch_id = jnp.arange(Bx * Tx) // Tx
    same_batch = batch_id[:, None] == batch_id[None, :]
    mask_add = jnp.where(same_batch, jnp.tile(in_block, (Bx, Bx)),
                         NEG_INF).astype(jnp.float32)                   # (BT, BT)

    f_slab = jnp.zeros((F_ROWS, F_COLS), jnp.float32)
    f_slab = f_slab.at[0:BT, 0:4 * D].set(cs)
    f_slab = f_slab.at[0:BT, 4 * D:4 * D + BT].set(mask_add)
    f_slab = f_slab.at[ROW_BPROJ, :].set(b_proj[0])
    f_slab = f_slab.at[ROW_B12, 0:2 * HIDDEN].set(b12[0])
    f_slab = f_slab.at[ROW_BO, 0:D].set(bo[0])
    f_slab = f_slab.at[ROW_B3, 0:D].set(b3[0])
    f_slab = f_slab.at[ROW_LN1G, 0:D].set(ln1_g[0])
    f_slab = f_slab.at[ROW_LN1B, 0:D].set(ln1_b[0])
    f_slab = f_slab.at[ROW_LN2G, 0:D].set(ln2_g[0])
    f_slab = f_slab.at[ROW_LN2B, 0:D].set(ln2_b[0])

    out2d = pl.pallas_call(
        gpt2_block_kernel,
        out_shape=jax.ShapeDtypeStruct((Bx * Tx, Dx), jnp.float32),
        grid=(1,),                                # whole problem in one step
        in_specs=[
            pl.BlockSpec((BT, D), lambda i: (0, 0)),
            pl.BlockSpec((F_ROWS, F_COLS), lambda i: (0, 0)),
            pl.BlockSpec((W_ROWS, W_COLS), lambda i: (0, 0)),
        ],
        out_specs=pl.BlockSpec((BT, D), lambda i: (0, 0)),
        compiler_params=pltpu.CompilerParams(
            dimension_semantics=("arbitrary",)),
    )(x2d, f_slab, w_slab)
    return out2d.reshape(Bx, Tx, Dx)


# ----------------------------- test harness -----------------------------
def _make_params(key):
    def lin(k, fan_in, fan_out):
        kw, kb = jax.random.split(k)
        w = jax.random.normal(kw, (fan_in, fan_out), jnp.float32) * 0.02
        b = jax.random.normal(kb, (1, fan_out), jnp.float32) * 0.02
        return w, b

    keys = jax.random.split(key, 8)
    ln1_g = jnp.ones((1, D), jnp.float32)
    ln1_b = jnp.zeros((1, D), jnp.float32)
    ln2_g = jnp.ones((1, D), jnp.float32)
    ln2_b = jnp.zeros((1, D), jnp.float32)
    wq, bq = lin(keys[0], D, D)
    wk, bk = lin(keys[1], D, D)
    wv, bv = lin(keys[2], D, D)
    wo, bo = lin(keys[3], D, D)
    w1, b1 = lin(keys[4], D, HIDDEN)   # gate proj
    w2, b2 = lin(keys[5], D, HIDDEN)   # up proj
    w3, b3 = lin(keys[6], HIDDEN, D)   # down proj
    return (ln1_g, ln1_b, wq, bq, wk, bk, wv, bv, wo, bo,
            ln2_g, ln2_b, w1, b1, w2, b2, w3, b3)


def _make_rope(seq_len, head_dim):
    half = head_dim // 2
    inv_freq = 1.0 / (10000.0 ** (jnp.arange(half, dtype=jnp.float32) / half))
    pos = jnp.arange(seq_len, dtype=jnp.float32)[:, None]
    ang = pos * inv_freq[None, :]
    cos = jnp.concatenate([jnp.cos(ang), jnp.cos(ang)], axis=-1)
    sin = jnp.concatenate([jnp.sin(ang), jnp.sin(ang)], axis=-1)
    return cos.astype(jnp.float32), sin.astype(jnp.float32)


def _reference(x, mask, cos, sin, params):
    (ln1_g, ln1_b, wq, bq, wk, bk, wv, bv, wo, bo,
     ln2_g, ln2_b, w1, b1, w2, b2, w3, b3) = params

    def ln(z, g, b):
        m = jnp.mean(z, axis=-1, keepdims=True)
        v_ = jnp.mean((z - m) ** 2, axis=-1, keepdims=True)
        return (z - m) * jax.lax.rsqrt(v_ + EPS) * g + b

    def rope(z):  # (B, T, H, hd)
        z1, z2 = z[..., :HALF], z[..., HALF:]
        rot = jnp.concatenate([-z2, z1], axis=-1)
        return z * cos[None, :, None, :] + rot * sin[None, :, None, :]

    h = ln(x, ln1_g, ln1_b)
    q = (h @ wq + bq).reshape(B, T, NUM_HEADS, HEAD_DIM)
    k = (h @ wk + bk).reshape(B, T, NUM_HEADS, HEAD_DIM)
    v = (h @ wv + bv).reshape(B, T, NUM_HEADS, HEAD_DIM)
    q, k = rope(q), rope(k)
    s = jnp.einsum('bqhd,bkhd->bhqk', q, k) / math.sqrt(HEAD_DIM)
    s = jnp.where(mask[None, None] > 0.5, NEG_INF, s)
    p = jax.nn.softmax(s, axis=-1)
    o = jnp.einsum('bhqk,bkhd->bqhd', p, v).reshape(B, T, D)
    x1 = x + (o @ wo + bo)
    h2 = ln(x1, ln2_g, ln2_b)
    g_ = h2 @ w1 + b1
    u_ = h2 @ w2 + b2
    return x1 + (g_ * jax.nn.sigmoid(g_) * u_) @ w3 + b3


if __name__ == "__main__":
    key = jax.random.PRNGKey(0)
    k_x, k_p = jax.random.split(key)

    x = jax.random.normal(k_x, (B, T, D), jnp.float32)
    # causal mask: 1.0 where future position (masked), 0.0 where attended
    mask = jnp.triu(jnp.ones((T, T), jnp.float32), k=1)
    cos, sin = _make_rope(T, HEAD_DIM)
    params = _make_params(k_p)

    out = gpt2_transformer_block(x, mask, cos, sin, params)
    out = jax.block_until_ready(out)

    assert out.shape == (B, T, D)
    assert bool(jnp.all(jnp.isfinite(out)))

    ref = _reference(x, mask, cos, sin, params)
    err = float(jnp.max(jnp.abs(out - ref)))
    assert err < 5e-2, f"max abs error vs reference: {err}"
    print("KERNEL_OK")
</pallas_src>

<mosaic_0001>
module attributes {stable_mosaic.version = 11 : i64} {
  func.func @gpt2_block_kernel(%arg0: i32, %arg1: memref<16x32xf32, #tpu.memory_space<vmem>>, %arg2: memref<24x256xf32, #tpu.memory_space<vmem>>, %arg3: memref<128x256xbf16, #tpu.memory_space<vmem>>, %arg4: memref<16x32xf32, #tpu.memory_space<vmem>>) attributes {dimension_semantics = [#tpu.dimension_semantics<arbitrary>], iteration_bounds = array<i64: 1>, scalar_prefetch = 0 : i64, scratch_operands = 0 : i64, tpu.core_type = #tpu.core_type<tc>, window_params = [{pipeline_mode = #tpu.pipeline_mode<synchronous>, transform_indices = @transform_0, window_bounds = array<i64: 16, 32>}, {pipeline_mode = #tpu.pipeline_mode<synchronous>, transform_indices = @transform_1, window_bounds = array<i64: 24, 256>}, {pipeline_mode = #tpu.pipeline_mode<synchronous>, transform_indices = @transform_2, window_bounds = array<i64: 128, 256>}, {pipeline_mode = #tpu.pipeline_mode<synchronous>, transform_indices = @transform_3, window_bounds = array<i64: 16, 32>}]} {
    %c0 = arith.constant 0 : index
    %c0_0 = arith.constant 0 : index
    %0 = vector.load %arg1[%c0, %c0_0] : memref<16x32xf32, #tpu.memory_space<vmem>>, vector<16x32xf32>
    %c0_1 = arith.constant 0 : index
    %c0_2 = arith.constant 0 : index
    %1 = vector.load %arg2[%c0_1, %c0_2] : memref<24x256xf32, #tpu.memory_space<vmem>>, vector<24x256xf32>
    %c0_3 = arith.constant 0 : index
    %c0_4 = arith.constant 0 : index
    %2 = vector.load %arg3[%c0_3, %c0_4] : memref<128x256xbf16, #tpu.memory_space<vmem>>, vector<128x256xbf16>
    %3 = vector.extract_strided_slice %1 {offsets = [0, 0], sizes = [16, 128], strides = [1, 1]} : vector<24x256xf32> to vector<16x128xf32>
    %4 = vector.extract_strided_slice %1 {offsets = [0, 128], sizes = [16, 16], strides = [1, 1]} : vector<24x256xf32> to vector<16x16xf32>
    %5 = vector.extract_strided_slice %1 {offsets = [16, 0], sizes = [1, 256], strides = [1, 1]} : vector<24x256xf32> to vector<1x256xf32>
    %6 = vector.extract_strided_slice %1 {offsets = [17, 0], sizes = [1, 128], strides = [1, 1]} : vector<24x256xf32> to vector<1x128xf32>
    %7 = vector.extract_strided_slice %1 {offsets = [18, 0], sizes = [1, 32], strides = [1, 1]} : vector<24x256xf32> to vector<1x32xf32>
    %8 = vector.extract_strided_slice %1 {offsets = [19, 0], sizes = [1, 32], strides = [1, 1]} : vector<24x256xf32> to vector<1x32xf32>
    %9 = vector.extract_strided_slice %1 {offsets = [20, 0], sizes = [1, 32], strides = [1, 1]} : vector<24x256xf32> to vector<1x32xf32>
    %10 = vector.extract_strided_slice %1 {offsets = [21, 0], sizes = [1, 32], strides = [1, 1]} : vector<24x256xf32> to vector<1x32xf32>
    %11 = vector.extract_strided_slice %1 {offsets = [22, 0], sizes = [1, 32], strides = [1, 1]} : vector<24x256xf32> to vector<1x32xf32>
    %12 = vector.extract_strided_slice %1 {offsets = [23, 0], sizes = [1, 32], strides = [1, 1]} : vector<24x256xf32> to vector<1x32xf32>
    %13 = vector.extract_strided_slice %2 {offsets = [0, 0], sizes = [32, 256], strides = [1, 1]} : vector<128x256xbf16> to vector<32x256xbf16>
    %14 = vector.extract_strided_slice %2 {offsets = [32, 0], sizes = [32, 128], strides = [1, 1]} : vector<128x256xbf16> to vector<32x128xbf16>
    %15 = vector.extract_strided_slice %2 {offsets = [64, 0], sizes = [64, 32], strides = [1, 1]} : vector<128x256xbf16> to vector<64x32xbf16>
    %cst = arith.constant dense<0.000000e+00> : vector<16xf32>
    %16 = vector.multi_reduction <add>, %0, %cst [1] : vector<16x32xf32> to vector<16xf32>
    %17 = vector.shape_cast %16 : vector<16xf32> to vector<16x1xf32>
    %cst_5 = arith.constant 3.200000e+01 : f32
    %18 = vector.broadcast %cst_5 : f32 to vector<16x1xf32>
    %19 = arith.divf %17, %18 : vector<16x1xf32>
    %20 = vector.broadcast %19 : vector<16x1xf32> to vector<16x32xf32>
    %21 = arith.subf %0, %20 : vector<16x32xf32>
    %22 = arith.mulf %21, %21 : vector<16x32xf32>
    %cst_6 = arith.constant dense<0.000000e+00> : vector<16xf32>
    %23 = vector.multi_reduction <add>, %22, %cst_6 [1] : vector<16x32xf32> to vector<16xf32>
    %24 = vector.shape_cast %23 : vector<16xf32> to vector<16x1xf32>
    %cst_7 = arith.constant 3.200000e+01 : f32
    %25 = vector.broadcast %cst_7 : f32 to vector<16x1xf32>
    %26 = arith.divf %24, %25 : vector<16x1xf32>
    %27 = vector.broadcast %19 : vector<16x1xf32> to vector<16x32xf32>
    %28 = arith.subf %0, %27 : vector<16x32xf32>
    %cst_8 = arith.constant 9.99999974E-6 : f32
    %29 = vector.broadcast %cst_8 : f32 to vector<16x1xf32>
    %30 = arith.addf %26, %29 : vector<16x1xf32>
    %31 = math.rsqrt %30 : vector<16x1xf32>
    %32 = vector.broadcast %31 : vector<16x1xf32> to vector<16x32xf32>
    %33 = arith.mulf %28, %32 : vector<16x32xf32>
    %34 = vector.broadcast %9 : vector<1x32xf32> to vector<16x32xf32>
    %35 = arith.mulf %33, %34 : vector<16x32xf32>
    %36 = vector.broadcast %10 : vector<1x32xf32> to vector<16x32xf32>
    %37 = arith.addf %35, %36 : vector<16x32xf32>
    %38 = arith.truncf %37 : vector<16x32xf32> to vector<16x32xbf16>
    %cst_9 = arith.constant dense<0.000000e+00> : vector<16x256xf32>
    %39 = tpu.matmul %38, %13, %cst_9 {dimension_numbers = #tpu.dot_dimension_numbers<[1], [0], [0], [1], [0, 0, 1, 1], [], []>} : vector<16x32xbf16>, vector<32x256xbf16>, vector<16x256xf32> -> vector<16x256xf32>
    %40 = vector.broadcast %5 : vector<1x256xf32> to vector<16x256xf32>
    %41 = arith.addf %39, %40 : vector<16x256xf32>
    %42 = vector.extract_strided_slice %41 {offsets = [0, 0], sizes = [16, 128], strides = [1, 1]} : vector<16x256xf32> to vector<16x128xf32>
    %43 = arith.mulf %42, %3 : vector<16x128xf32>
    %44 = vector.extract_strided_slice %43 {offsets = [0, 0], sizes = [16, 64], strides = [1, 1]} : vector<16x128xf32> to vector<16x64xf32>
    %45 = vector.extract_strided_slice %43 {offsets = [0, 64], sizes = [16, 64], strides = [1, 1]} : vector<16x128xf32> to vector<16x64xf32>
    %46 = arith.addf %44, %45 : vector<16x64xf32>
    %47 = vector.extract_strided_slice %46 {offsets = [0, 0], sizes = [16, 32], strides = [1, 1]} : vector<16x64xf32> to vector<16x32xf32>
    %48 = arith.truncf %47 : vector<16x32xf32> to vector<16x32xbf16>
    %49 = vector.extract_strided_slice %46 {offsets = [0, 32], sizes = [16, 32], strides = [1, 1]} : vector<16x64xf32> to vector<16x32xf32>
    %50 = arith.truncf %49 : vector<16x32xf32> to vector<16x32xbf16>
    %51 = vector.extract_strided_slice %41 {offsets = [0, 128], sizes = [16, 128], strides = [1, 1]} : vector<16x256xf32> to vector<16x128xf32>
    %52 = arith.truncf %51 : vector<16x128xf32> to vector<16x128xbf16>
    %cst_10 = arith.constant 0.000000e+00 : f32
    %53 = vector.broadcast %cst_10 : f32 to vector<16x32xf32>
    %54 = vector.extract_strided_slice %48 {offsets = [0, 0], sizes = [16, 8], strides = [1, 1]} : vector<16x32xbf16> to vector<16x8xbf16>
    %55 = vector.extract_strided_slice %50 {offsets = [0, 0], sizes = [16, 8], strides = [1, 1]} : vector<16x32xbf16> to vector<16x8xbf16>
    %cst_11 = arith.constant dense<0.000000e+00> : vector<16x16xf32>
    %56 = tpu.matmul %54, %55, %cst_11 {dimension_numbers = #tpu.dot_dimension_numbers<[1], [1], [0], [0], [0, 0, 1, 0], [], []>} : vector<16x8xbf16>, vector<16x8xbf16>, vector<16x16xf32> -> vector<16x16xf32>
    %57 = arith.addf %56, %4 : vector<16x16xf32>
    %cst_12 = arith.constant dense<0xFF800000> : vector<16xf32>
    %58 = vector.multi_reduction <maximumf>, %57, %cst_12 [1] : vector<16x16xf32> to vector<16xf32>
    %59 = vector.shape_cast %58 : vector<16xf32> to vector<16x1xf32>
    %60 = vector.broadcast %59 : vector<16x1xf32> to vector<16x16xf32>
    %61 = arith.subf %57, %60 : vector<16x16xf32>
    %62 = math.exp %61 : vector<16x16xf32>
    %cst_13 = arith.constant dense<0.000000e+00> : vector<16xf32>
    %63 = vector.multi_reduction <add>, %62, %cst_13 [1] : vector<16x16xf32> to vector<16xf32>
    %64 = vector.shape_cast %63 : vector<16xf32> to vector<16x1xf32>
    %65 = tpu.reciprocal %64 {approx = true} : vector<16x1xf32> -> vector<16x1xf32>
    %66 = vector.broadcast %65 : vector<16x1xf32> to vector<16x16xf32>
    %67 = arith.mulf %62, %66 : vector<16x16xf32>
    %68 = arith.truncf %67 : vector<16x16xf32> to vector<16x16xbf16>
    %69 = vector.extract_strided_slice %52 {offsets = [0, 0], sizes = [16, 32], strides = [1, 1]} : vector<16x128xbf16> to vector<16x32xbf16>
    %cst_14 = arith.constant dense<0.000000e+00> : vector<16x32xf32>
    %70 = tpu.matmul %68, %69, %cst_14 {dimension_numbers = #tpu.dot_dimension_numbers<[1], [0], [0], [1], [0, 0, 1, 1], [], []>} : vector<16x16xbf16>, vector<16x32xbf16>, vector<16x32xf32> -> vector<16x32xf32>
    %71 = arith.addf %53, %70 : vector<16x32xf32>
    %72 = vector.extract_strided_slice %48 {offsets = [0, 8], sizes = [16, 8], strides = [1, 1]} : vector<16x32xbf16> to vector<16x8xbf16>
    %73 = vector.extract_strided_slice %50 {offsets = [0, 8], sizes = [16, 8], strides = [1, 1]} : vector<16x32xbf16> to vector<16x8xbf16>
    %cst_15 = arith.constant dense<0.000000e+00> : vector<16x16xf32>
    %74 = tpu.matmul %72, %73, %cst_15 {dimension_numbers = #tpu.dot_dimension_numbers<[1], [1], [0], [0], [0, 0, 1, 0], [], []>} : vector<16x8xbf16>, vector<16x8xbf16>, vector<16x16xf32> -> vector<16x16xf32>
    %75 = arith.addf %74, %4 : vector<16x16xf32>
    %cst_16 = arith.constant dense<0xFF800000> : vector<16xf32>
    %76 = vector.multi_reduction <maximumf>, %75, %cst_16 [1] : vector<16x16xf32> to vector<16xf32>
    %77 = vector.shape_cast %76 : vector<16xf32> to vector<16x1xf32>
    %78 = vector.broadcast %77 : vector<16x1xf32> to vector<16x16xf32>
    %79 = arith.subf %75, %78 : vector<16x16xf32>
    %80 = math.exp %79 : vector<16x16xf32>
    %cst_17 = arith.constant dense<0.000000e+00> : vector<16xf32>
    %81 = vector.multi_reduction <add>, %80, %cst_17 [1] : vector<16x16xf32> to vector<16xf32>
    %82 = vector.shape_cast %81 : vector<16xf32> to vector<16x1xf32>
    %83 = tpu.reciprocal %82 {approx = true} : vector<16x1xf32> -> vector<16x1xf32>
    %84 = vector.broadcast %83 : vector<16x1xf32> to vector<16x16xf32>
    %85 = arith.mulf %80, %84 : vector<16x16xf32>
    %86 = arith.truncf %85 : vector<16x16xf32> to vector<16x16xbf16>
    %87 = vector.extract_strided_slice %52 {offsets = [0, 32], sizes = [16, 32], strides = [1, 1]} : vector<16x128xbf16> to vector<16x32xbf16>
    %cst_18 = arith.constant dense<0.000000e+00> : vector<16x32xf32>
    %88 = tpu.matmul %86, %87, %cst_18 {dimension_numbers = #tpu.dot_dimension_numbers<[1], [0], [0], [1], [0, 0, 1, 1], [], []>} : vector<16x16xbf16>, vector<16x32xbf16>, vector<16x32xf32> -> vector<16x32xf32>
    %89 = arith.addf %71, %88 : vector<16x32xf32>
    %90 = vector.extract_strided_slice %48 {offsets = [0, 16], sizes = [16, 8], strides = [1, 1]} : vector<16x32xbf16> to vector<16x8xbf16>
    %91 = vector.extract_strided_slice %50 {offsets = [0, 16], sizes = [16, 8], strides = [1, 1]} : vector<16x32xbf16> to vector<16x8xbf16>
    %cst_19 = arith.constant dense<0.000000e+00> : vector<16x16xf32>
    %92 = tpu.matmul %90, %91, %cst_19 {dimension_numbers = #tpu.dot_dimension_numbers<[1], [1], [0], [0], [0, 0, 1, 0], [], []>} : vector<16x8xbf16>, vector<16x8xbf16>, vector<16x16xf32> -> vector<16x16xf32>
    %93 = arith.addf %92, %4 : vector<16x16xf32>
    %cst_20 = arith.constant dense<0xFF800000> : vector<16xf32>
    %94 = vector.multi_reduction <maximumf>, %93, %cst_20 [1] : vector<16x16xf32> to vector<16xf32>
    %95 = vector.shape_cast %94 : vector<16xf32> to vector<16x1xf32>
    %96 = vector.broadcast %95 : vector<16x1xf32> to vector<16x16xf32>
    %97 = arith.subf %93, %96 : vector<16x16xf32>
    %98 = math.exp %97 : vector<16x16xf32>
    %cst_21 = arith.constant dense<0.000000e+00> : vector<16xf32>
    %99 = vector.multi_reduction <add>, %98, %cst_21 [1] : vector<16x16xf32> to vector<16xf32>
    %100 = vector.shape_cast %99 : vector<16xf32> to vector<16x1xf32>
    %101 = tpu.reciprocal %100 {approx = true} : vector<16x1xf32> -> vector<16x1xf32>
    %102 = vector.broadcast %101 : vector<16x1xf32> to vector<16x16xf32>
    %103 = arith.mulf %98, %102 : vector<16x16xf32>
    %104 = arith.truncf %103 : vector<16x16xf32> to vector<16x16xbf16>
    %105 = vector.extract_strided_slice %52 {offsets = [0, 64], sizes = [16, 32], strides = [1, 1]} : vector<16x128xbf16> to vector<16x32xbf16>
    %cst_22 = arith.constant dense<0.000000e+00> : vector<16x32xf32>
    %106 = tpu.matmul %104, %105, %cst_22 {dimension_numbers = #tpu.dot_dimension_numbers<[1], [0], [0], [1], [0, 0, 1, 1], [], []>} : vector<16x16xbf16>, vector<16x32xbf16>, vector<16x32xf32> -> vector<16x32xf32>
    %107 = arith.addf %89, %106 : vector<16x32xf32>
    %108 = vector.extract_strided_slice %48 {offsets = [0, 24], sizes = [16, 8], strides = [1, 1]} : vector<16x32xbf16> to vector<16x8xbf16>
    %109 = vector.extract_strided_slice %50 {offsets = [0, 24], sizes = [16, 8], strides = [1, 1]} : vector<16x32xbf16> to vector<16x8xbf16>
    %cst_23 = arith.constant dense<0.000000e+00> : vector<16x16xf32>
    %110 = tpu.matmul %108, %109, %cst_23 {dimension_numbers = #tpu.dot_dimension_numbers<[1], [1], [0], [0], [0, 0, 1, 0], [], []>} : vector<16x8xbf16>, vector<16x8xbf16>, vector<16x16xf32> -> vector<16x16xf32>
    %111 = arith.addf %110, %4 : vector<16x16xf32>
    %cst_24 = arith.constant dense<0xFF800000> : vector<16xf32>
    %112 = vector.multi_reduction <maximumf>, %111, %cst_24 [1] : vector<16x16xf32> to vector<16xf32>
    %113 = vector.shape_cast %112 : vector<16xf32> to vector<16x1xf32>
    %114 = vector.broadcast %113 : vector<16x1xf32> to vector<16x16xf32>
    %115 = arith.subf %111, %114 : vector<16x16xf32>
    %116 = math.exp %115 : vector<16x16xf32>
    %cst_25 = arith.constant dense<0.000000e+00> : vector<16xf32>
    %117 = vector.multi_reduction <add>, %116, %cst_25 [1] : vector<16x16xf32> to vector<16xf32>
    %118 = vector.shape_cast %117 : vector<16xf32> to vector<16x1xf32>
    %119 = tpu.reciprocal %118 {approx = true} : vector<16x1xf32> -> vector<16x1xf32>
    %120 = vector.broadcast %119 : vector<16x1xf32> to vector<16x16xf32>
    %121 = arith.mulf %116, %120 : vector<16x16xf32>
    %122 = arith.truncf %121 : vector<16x16xf32> to vector<16x16xbf16>
    %123 = vector.extract_strided_slice %52 {offsets = [0, 96], sizes = [16, 32], strides = [1, 1]} : vector<16x128xbf16> to vector<16x32xbf16>
    %cst_26 = arith.constant dense<0.000000e+00> : vector<16x32xf32>
    %124 = tpu.matmul %122, %123, %cst_26 {dimension_numbers = #tpu.dot_dimension_numbers<[1], [0], [0], [1], [0, 0, 1, 1], [], []>} : vector<16x16xbf16>, vector<16x32xbf16>, vector<16x32xf32> -> vector<16x32xf32>
    %125 = arith.addf %107, %124 : vector<16x32xf32>
    %126 = arith.addf %0, %125 : vector<16x32xf32>
    %127 = vector.broadcast %7 : vector<1x32xf32> to vector<16x32xf32>
    %128 = arith.addf %126, %127 : vector<16x32xf32>
    %cst_27 = arith.constant dense<0.000000e+00> : vector<16xf32>
    %129 = vector.multi_reduction <add>, %128, %cst_27 [1] : vector<16x32xf32> to vector<16xf32>
    %130 = vector.shape_cast %129 : vector<16xf32> to vector<16x1xf32>
    %cst_28 = arith.constant 3.200000e+01 : f32
    %131 = vector.broadcast %cst_28 : f32 to vector<16x1xf32>
    %132 = arith.divf %130, %131 : vector<16x1xf32>
    %133 = vector.broadcast %132 : vector<16x1xf32> to vector<16x32xf32>
    %134 = arith.subf %128, %133 : vector<16x32xf32>
    %135 = arith.mulf %134, %134 : vector<16x32xf32>
    %cst_29 = arith.constant dense<0.000000e+00> : vector<16xf32>
    %136 = vector.multi_reduction <add>, %135, %cst_29 [1] : vector<16x32xf32> to vector<16xf32>
    %137 = vector.shape_cast %136 : vector<16xf32> to vector<16x1xf32>
    %cst_30 = arith.constant 3.200000e+01 : f32
    %138 = vector.broadcast %cst_30 : f32 to vector<16x1xf32>
    %139 = arith.divf %137, %138 : vector<16x1xf32>
    %140 = vector.broadcast %132 : vector<16x1xf32> to vector<16x32xf32>
    %141 = arith.subf %128, %140 : vector<16x32xf32>
    %cst_31 = arith.constant 9.99999974E-6 : f32
    %142 = vector.broadcast %cst_31 : f32 to vector<16x1xf32>
    %143 = arith.addf %139, %142 : vector<16x1xf32>
    %144 = math.rsqrt %143 : vector<16x1xf32>
    %145 = vector.broadcast %144 : vector<16x1xf32> to vector<16x32xf32>
    %146 = arith.mulf %141, %145 : vector<16x32xf32>
    %147 = vector.broadcast %11 : vector<1x32xf32> to vector<16x32xf32>
    %148 = arith.mulf %146, %147 : vector<16x32xf32>
    %149 = vector.broadcast %12 : vector<1x32xf32> to vector<16x32xf32>
    %150 = arith.addf %148, %149 : vector<16x32xf32>
    %151 = arith.truncf %150 : vector<16x32xf32> to vector<16x32xbf16>
    %cst_32 = arith.constant dense<0.000000e+00> : vector<16x128xf32>
    %152 = tpu.matmul %151, %14, %cst_32 {dimension_numbers = #tpu.dot_dimension_numbers<[1], [0], [0], [1], [0, 0, 1, 1], [], []>} : vector<16x32xbf16>, vector<32x128xbf16>, vector<16x128xf32> -> vector<16x128xf32>
    %153 = vector.broadcast %6 : vector<1x128xf32> to vector<16x128xf32>
    %154 = arith.addf %152, %153 : vector<16x128xf32>
    %155 = vector.extract_strided_slice %154 {offsets = [0, 0], sizes = [16, 64], strides = [1, 1]} : vector<16x128xf32> to vector<16x64xf32>
    %156 = vector.extract_strided_slice %154 {offsets = [0, 64], sizes = [16, 64], strides = [1, 1]} : vector<16x128xf32> to vector<16x64xf32>
    %157 = arith.negf %155 : vector<16x64xf32>
    %158 = math.exp %157 : vector<16x64xf32>
    %cst_33 = arith.constant 1.000000e+00 : f32
    %159 = vector.broadcast %cst_33 : f32 to vector<16x64xf32>
    %160 = arith.addf %159, %158 : vector<16x64xf32>
    %161 = arith.divf %159, %160 : vector<16x64xf32>
    %162 = arith.mulf %155, %161 : vector<16x64xf32>
    %163 = arith.mulf %162, %156 : vector<16x64xf32>
    %164 = arith.truncf %163 : vector<16x64xf32> to vector<16x64xbf16>
    %cst_34 = arith.constant dense<0.000000e+00> : vector<16x32xf32>
    %165 = tpu.matmul %164, %15, %cst_34 {dimension_numbers = #tpu.dot_dimension_numbers<[1], [0], [0], [1], [0, 0, 1, 1], [], []>} : vector<16x64xbf16>, vector<64x32xbf16>, vector<16x32xf32> -> vector<16x32xf32>
    %166 = vector.broadcast %8 : vector<1x32xf32> to vector<16x32xf32>
    %167 = arith.addf %165, %166 : vector<16x32xf32>
    %168 = arith.addf %128, %167 : vector<16x32xf32>
    %c0_35 = arith.constant 0 : index
    %c0_36 = arith.constant 0 : index
    %169 = vector.load %arg4[%c0_35, %c0_36] : memref<16x32xf32, #tpu.memory_space<vmem>>, vector<16x32xf32>
    tpu.vector_store %arg4[%c0_35, %c0_36], %168 {strides = array<i32>} : memref<16x32xf32, #tpu.memory_space<vmem>>, vector<16x32xf32>,
    return
  }
  func.func @transform_0(%arg0: i32) -> (i32, i32) {
    %c0_i32 = arith.constant 0 : i32
    %c0_i32_0 = arith.constant 0 : i32
    %c0_i32_1 = arith.constant 0 : i32
    return %c0_i32, %c0_i32_0 : i32, i32
  }
  func.func @transform_1(%arg0: i32) -> (i32, i32) {
    %c0_i32 = arith.constant 0 : i32
    %c0_i32_0 = arith.constant 0 : i32
    %c0_i32_1 = arith.constant 0 : i32
    return %c0_i32, %c0_i32_0 : i32, i32
  }
  func.func @transform_2(%arg0: i32) -> (i32, i32) {
    %c0_i32 = arith.constant 0 : i32
    %c0_i32_0 = arith.constant 0 : i32
    %c0_i32_1 = arith.constant 0 : i32
    return %c0_i32, %c0_i32_0 : i32, i32
  }
  func.func @transform_3(%arg0: i32) -> (i32, i32) {
    %c0_i32 = arith.constant 0 : i32
    %c0_i32_0 = arith.constant 0 : i32
    %c0_i32_1 = arith.constant 0 : i32
    return %c0_i32, %c0_i32_0 : i32, i32
  }
}

</mosaic_0001>

<bundles_post_ra>
// kernel: tpu_custom_call.1
= control target key start
LH: loop header
LB: loop body
LE: loop exit
PB: predicated region body
PF: predicated region fallthrough
CT: control target
= control target key end

     0   :  { %8 = vsyncpa [#allocation3], 0  ;;  %s1419_s0 = inlined_call_operand.hbm [shape: f32[16,32], index: 0, kind: input, shape index: {}]   ;;  %s1420_s1 = inlined_call_operand.hbm [shape: f32[24,256], index: 1, kind: input, shape index: {}]   ;;  %s1421_s2 = inlined_call_operand.hbm [shape: bf16[128,256], index: 2, kind: input, shape index: {}]   ;;  %s1422_s3 = inlined_call_operand.hbm [shape: f32[16,32], index: 3, kind: output, shape index: {}]  }
   0x1   :  { %9 = vsyncpa [#allocation6], 0 }
   0x2   :  { %10 = vsyncpa [#allocation4], 0  ;;  %s1205_s12 = smov [#allocation5]  }
   0x3   :  { %s28_s13 = sshll.u32 %s1205_s12, 4  ;;  %s29_s13 = int_to_ptr.vmem [resolvable:$true] %s28_s13 }
   0x4   :  { %s1127_s14 = scalar_lea.vmem %s29_s13, 768  ;;  %p1132_p1 = scmp.lt.s32.totalorder %s29_s13, %s29_s13 }
   0x5   :  { %p1128_p0 = scmp.ne.s32.totalorder %s29_s13, %s1127_s14  ;;  %p1133_p2 = scmp.lt.s32.totalorder %s1127_s14, %s1127_s14 }
   0x7   :  { %p1134_p3 = por %p1133_p2, %p1132_p1 }
   0x9   :  { %p1135_p4 = pnand %p1134_p3, %p1128_p0 }
   0xb   :  { %1138 = shalt.err (!%p1135_p4)
}
   0xc   :  { %s1206_s15 = smov 256   ;;  %s1207_s16 = smov 16  }
   0xd   :  { %34 = dma.hbm_to_vmem [thread:$0]  %s1420_s1, 768, %s29_s13, [#allocation6], %s1206_s15, %s1206_s15, %s1207_s16  }
   0xe   :  { %s1208_s19 = smov [#allocation2]  }
   0xf   :  { %s16_s20 = sshll.u32 %s1208_s19, 4  ;;  %s17_s20 = int_to_ptr.vmem [resolvable:$true] %s16_s20 }
  0x10   :  { %s1147_s21 = scalar_lea.vmem %s17_s20, 256  ;;  %p1152_p6 = scmp.lt.s32.totalorder %s17_s20, %s17_s20 }
  0x11   :  { %p1148_p5 = scmp.ne.s32.totalorder %s17_s20, %s1147_s21  ;;  %p1153_p7 = scmp.lt.s32.totalorder %s1147_s21, %s1147_s21 }
  0x13   :  { %p1154_p8 = por %p1153_p7, %p1152_p6 }
  0x15   :  { %p1155_p9 = pnand %p1154_p8, %p1148_p5 }
  0x17   :  { %1158 = shalt.err (!%p1155_p9)
}
  0x18   :  { %s1209_s22 = smov 128   ;;  %s1210_s23 = smov 8  }
  0x19   :  { %22 = dma.hbm_to_vmem [thread:$0]  %s1419_s0, 256, %s17_s20, [#allocation3], %s1209_s22, %s1209_s22, %s1210_s23  }
  0x1a   :  { %s1211_s1 = smov [#allocation7]  }
  0x1b   :  { %s40_s26 = sshll.u32 %s1211_s1, 4  ;;  %s41_s26 = int_to_ptr.vmem [resolvable:$true] %s40_s26 }
  0x1c   :  { %s1167_s27 = scalar_lea.vmem %s41_s26, 2048  ;;  %p1172_p11 = scmp.lt.s32.totalorder %s41_s26, %s41_s26 }
  0x1d   :  { %p1168_p10 = scmp.ne.s32.totalorder %s41_s26, %s1167_s27  ;;  %p1173_p12 = scmp.lt.s32.totalorder %s1167_s27, %s1167_s27 }
  0x1f   :  { %p1174_p13 = por %p1173_p12, %p1172_p11 }
  0x21   :  { %p1175_p0 = pnand %p1174_p13, %p1168_p10 }
  0x23   :  { %1178 = shalt.err (!%p1175_p0)
}
  0x24   :  { %46 = dma.hbm_to_vmem [thread:$0]  %s1421_s2, 2048, %s41_s26, [#allocation6], %s1209_s22, %s1209_s22, %s1210_s23  }
  0x25   :  { %1199 = dma.done.wait [#allocation3], 256  }
  0x26   :  { %1200 = vsyncadd [#allocation3], 4294967040 }
  0x27   :  { %1201 = dma.done.wait [#allocation6], 2816  }
  0x28   :  { %1202 = vsyncadd [#allocation6], 4294964480  ;;  %vm81_vm0 = vcmask 261120   ;;  %v1260_v0 = vld [vmem:[#allocation2] sm:$0xff]  ;;  %v1262_v1 = vld [vmem:[#allocation2 + $0x8] sm:$0xff]  ;;  %v1212_v17 = vmov 0   ;;  %v109_v25 = vlaneseq }
  0x29   :  { %v82_v2 = vsel %vm81_vm0, %v1260_v0, 0.0  ;;  %v85_v3 = vsel %vm81_vm0, %v1262_v1, 0.0  ;;  %v1059_v14 = vld [vmem:[#allocation7 + $0x14] ss:$8 sps:$4 sm:$0xff]   ;;  %v1061_v15 = vld [vmem:[#allocation7 + $0x10] ss:$8 sps:$4 sm:$0xff]   ;;  %185 = vmatprep.mubr.bf16.mxu1 %v1212_v17 }
  0x2a   :  { %83 = vadd.xlane.f32.xlu0 %v82_v2  ;;  %v1062_v16 = vld [vmem:[#allocation7 + $0x4] ss:$8 sps:$4 sm:$0xff]   ;;  %165 = vmatprep.subr.bf16.mxu1 %v1059_v14  ;;  %v1064_v18 = vld [vmem:[#allocation7] ss:$8 sps:$4 sm:$0xff]   ;;  %v1272_v26 = vshrl.u32 %v109_v25, 7  ;;  %v1275_v28 = vld [vmem:[#allocation5 + $0x20] sm:$0xff] }
  0x2b   :  { %166 = vmatpush1.bf16.msra.mxu1 %v1061_v15  ;;  %v59_v43 = vld [vmem:[#allocation5] sm:$0xff]  ;;  %v61_v48 = vld [vmem:[#allocation5 + $0x10] sm:$0xff]  ;;  %s1213_s0 = smov 64   ;;  %v1214_v52 = vmov 0.0   ;;  %vm1215_vm1 = vmmov 0   ;;  %s1216_s2 = smov 88  }
  0x2c   :  { %167 = vmatprep.subr.bf16.mxu1 %v1062_v16  ;;  %v111_v27 = vsub.s32 4, %v1272_v26  ;;  %v117_v32 = vsub.s32 5, %v1272_v26  ;;  %v124_v41 = vsub.s32 0, %v1272_v26  ;;  %977 = vmatprep.subr.bf16.mxu0 %v1214_v52  ;;  %s1217_s30 = smov 120   ;;  %vm213_vm2 = vcmask 64512   ;;  %v64_v58 = vld [vmem:[#allocation5 + $0x28] sm:$0xff] }
  0x2d   :  { %979 = vmatprep.mubr.msk.bf16.mxu0 %vm1215_vm1, %v1214_v52  ;;  %vm261_vm3 = vcmask 130048   ;;  %s1218_s4 = smov 96   ;;  %s1219_s5 = smov 80   ;;  %vm857_vm4 = vcmask 523264  }
  0x2e   :  { %86 = vadd.xlane.f32.xlu0 %v85_v3  ;;  %v112_v31 = vrot.slane %v1275_v28, %v111_v27  ;;  %v118_v36 = vrot.slane %v1275_v28, %v117_v32  ;;  %v125_v42 = vrot.slane %v1275_v28, %v124_v41  ;;  %v129_v62 = vrot.slane %v64_v58, %v124_v41  ;;  %s1220_s6 = smov 112   ;;  %s1221_s7 = smov 104  }
  0x2f   :  { %168 = vmatpush1.bf16.msra.mxu1 %v1064_v18  ;;  %s1222_s8 = smov 72   ;;  %s1223_s9 = smov 32  }
  0x30   :  { %971 = vmatprep.subr.bf16.mxu1 %v1214_v52  ;;  %s1224_s10 = smov [#allocation8]  }
  0x31   :  { %s911_s11 = sshll.u32 %s1224_s10, 4  ;;  %s912_s11 = int_to_ptr.vmem [resolvable:$true] %s911_s11 }
  0x32   :  { %s1179_s12 = scalar_lea.vmem %s912_s11, 256  ;;  %p1184_p2 = scmp.lt.s32.totalorder %s912_s11, %s912_s11 }
  0x33   :  { %p1180_p1 = scmp.ne.s32.totalorder %s912_s11, %s1179_s12  ;;  %p1185_p3 = scmp.lt.s32.totalorder %s1179_s12, %s1179_s12 }
  0x35   :  { %p1186_p4 = por %p1185_p3, %p1184_p2 }
  0x37   :  { %p1187_p5 = pnand %p1186_p4, %p1180_p1 }
  0xb3   :  { %v84_v4 = vpop.xlane.xlu0 %83 }
  0xb4   :  { %v89_v5 = vmul.f32 0.03125, %v84_v4 }
  0xb6   :  { %v91_v6 = vsub.f32 %v1260_v0, %v89_v5  ;;  %v1304_v5 = vld [vmem:[#allocation5 + $0x8] sm:$0xff] }
  0xb7   :  { %v87_v7 = vpop.xlane.xlu0 %86 }
  0xb8   :  { %v90_v8 = vmul.f32 0.03125, %v87_v7  ;;  %v93_v9 = vmul.f32 %v91_v6, %v91_v6 }
  0xba   :  { %v92_v10 = vsub.f32 %v1262_v1, %v90_v8  ;;  %v95_v11 = vsel %vm81_vm0, %v93_v9, 0.0  ;;  %v1307_v9 = vld [vmem:[#allocation5 + $0x18] sm:$0xff] }
  0xbb   :  { %96 = vadd.xlane.f32.xlu1 %v95_v11 }
  0xbc   :  { %v94_v12 = vmul.f32 %v92_v10, %v92_v10 }
  0xbe   :  { %v98_v13 = vsel %vm81_vm0, %v94_v12, 0.0 }
  0xbf   :  { %99 = vadd.xlane.f32.xlu1 %v98_v13 }
 0x144   :  { %v97_v19 = vpop.xlane.xlu1 %96 }
 0x145   :  { %v101_v20 = vmul.f32 0.03125, %v97_v19 }
 0x147   :  { %v103_v21 = vadd.f32 1e-05, %v101_v20 }
 0x148   :  { %v100_v22 = vpop.xlane.xlu1 %99 }
 0x149   :  { %1071 = vrsqrt.f32 %v103_v21  ;;  %v102_v23 = vmul.f32 0.03125, %v100_v22 }
 0x14b   :  { %v104_v24 = vadd.f32 1e-05, %v102_v23 }
 0x14d   :  { %1073 = vrsqrt.f32 %v104_v24 }
 0x156   :  { %v1072_v29 = vpop.eup %1071 }
 0x157   :  { %v107_v30 = vmul.f32 %v1072_v29, %v91_v6 }
 0x159   :  { %v113_v35 = vmul.f32 %v112_v31, %v107_v30 }
 0x15a   :  { %v1074_v33 = vpop.eup %1073 }
 0x15b   :  { %v108_v34 = vmul.f32 %v1074_v33, %v92_v10  ;;  %v119_v38 = vadd.f32 %v118_v36, %v113_v35 }
 0x15d   :  { %v114_v37 = vmul.f32 %v112_v31, %v108_v34 }
 0x15f   :  { %v120_v39 = vadd.f32 %v118_v36, %v114_v37 }
 0x161   :  { %v121_v40 = vpack.c.bf16 %v120_v39, %v119_v38 }
 0x163   :  { %928 = vmatmul.mubr.msk.bf16.vlgmr.msra.gmra.mxu1 %vm81_vm0, %v121_v40 }
 0x164   :  { %973 = vmatprep.mubr.msk.bf16.mxu1 %vm1215_vm1, %v1214_v52 }
 0x223   :  { %v187_v44 = vpop.f32.mrf.mxu1 }
 0x224   :  { %v188_v45 = vadd.f32 %v187_v44, %v125_v42 }
 0x225   :  { %v189_v46 = vpop.f32.mrf.mxu1 }
 0x226   :  { %v196_v47 = vmul.f32 %v188_v45, %v59_v43  ;;  %v190_v2 = vadd.f32 %v189_v46, %v129_v62 }
 0x227   :  { %v191_v49 = vpop.f32.mrf.mxu1 }
 0x228   :  { %v192_v50 = vadd.f32 %v191_v49, %v125_v42  ;;  %200 = vrot.lane.b32.xlu0 %v196_v47, %s1213_s0 }
 0x229   :  { %v193_v60 = vpop.f32.mrf.mxu1 }
 0x22a   :  { %v197_v51 = vmul.f32 %v192_v50, %v61_v48  ;;  %v194_v63 = vadd.f32 %v193_v60, %v129_v62 }
 0x22c   :  { %202 = vrot.lane.b32.xlu1 %v197_v51, %s1213_s0  ;;  %v1297_v3 = vpack.c.bf16 %v194_v63, %v190_v2 }
 0x29a   :  { %v201_v53 = vpop.permute.xlu0 %200 }
 0x29b   :  { %v206_v55 = vadd.f32 %v201_v53, %v196_v47 }
 0x29e   :  { %v203_v54 = vpop.permute.xlu1 %202 }
 0x29f   :  { %v207_v56 = vadd.f32 %v203_v54, %v197_v51 }
 0x2a1   :  { %v1291_v57 = vpack.c.bf16 %v207_v56, %v206_v55 }
 0x2a3   :  { %287 = vrot.lane.b32.xlu1 %v1291_v57, %s1216_s2 }
 0x2a7   :  { %285 = vrot.lane.b32.xlu1 %v1291_v57, %s1217_s30 }
 0x315   :  { %v288_v59 = vpop.permute.xlu1 %287 }
 0x316   :  { %v293_v61 = vsel %vm213_vm2, %v288_v59, 0 }
 0x317   :  { %978 = vmatpush3.bf16.xpose.msra.mxu0 %v293_v61 }
 0x318   :  { %989 = vmatprep.subr.bf16.mxu0 %v1214_v52 }
 0x319   :  { %v286_v4 = vpop.permute.xlu1 %285 }
 0x31e   :  { %980 = vmatmul.mubr.msk.bf16.vlgmr.msra.gmra.mxu0 %vm213_vm2, %v286_v4 }
 0x31f   :  { %990 = vmatpush3.bf16.msra.mxu0 %v1297_v3  ;;  %991 = vmatprep.mubr.msk.bf16.mxu0 %vm1215_vm1, %v1214_v52 }
 0x320   :  { %1001 = vmatprep.subr.bf16.mxu0 %v1214_v52 }
 0x3de   :  { %v329_v6 = vpop.f32.mrf.mxu0 }
 0x3df   :  { %v330_v7 = vadd.f32 %v329_v6, %v1304_v5 }
 0x3e0   :  { %v981_v8 = vpop.f32.mrf.mxu0 }
 0x3e1   :  { %v336_v10 = vsel %vm261_vm3, %v330_v7, -inf }
 0x3e2   :  { %337 = vmax.xlane.f32.xlu0 %v336_v10  ;;  %v332_v11 = vpop.f32.mrf.mxu0 }
 0x3e3   :  { %v333_v12 = vadd.f32 %v332_v11, %v1307_v9 }
 0x3e4   :  { %v982_v13 = vpop.f32.mrf.mxu0 }
 0x3e5   :  { %v339_v14 = vsel %vm261_vm3, %v333_v12, -inf }
 0x3e6   :  { %340 = vmax.xlane.f32.xlu1 %v339_v14 }
 0x3f7   :  { %360 = vrot.lane.b32.xlu1 %v1297_v3, %s1218_s4 }
 0x3fb   :  { %453 = vrot.lane.b32.xlu1 %v1291_v57, %s1219_s5 }
 0x3ff   :  { %451 = vrot.lane.b32.xlu1 %v1291_v57, %s1220_s6 }
 0x403   :  { %574 = vrot.lane.b32.xlu1 %v1291_v57, %s1221_s7 }
 0x46b   :  { %v338_v15 = vpop.xlane.xlu0 %337 }
 0x46c   :  { %v342_v16 = vsub.f32 %v330_v7, %v338_v15 }
 0x46e   :  { %v344_v17 = vmul.f32 1.442695, %v342_v16 }
 0x46f   :  { %v341_v18 = vpop.xlane.xlu1 %340 }
 0x470   :  { %1075 = vpow2.f32 %v344_v17  ;;  %v343_v19 = vsub.f32 %v333_v12, %v341_v18 }
 0x472   :  { %v346_v20 = vmul.f32 1.442695, %v343_v19 }
 0x473   :  { %v361_v31 = vpop.permute.xlu1 %360 }
 0x474   :  { %1077 = vpow2.f32 %v346_v20 }
 0x477   :  { %v454_v36 = vpop.permute.xlu1 %453 }
 0x478   :  { %v459_v38 = vsel %vm213_vm2, %v454_v36, 0 }
 0x47b   :  { %v452_v40 = vpop.permute.xlu1 %451 }
 0x47d   :  { %v1076_v21 = vpop.eup %1075 }
 0x47e   :  { %v348_v22 = vsel %vm261_vm3, %v1076_v21, 0.0 }
 0x47f   :  { %349 = vadd.xlane.f32.xlu0 %v348_v22  ;;  %v575_v42 = vpop.permute.xlu1 %574 }
 0x481   :  { %v1078_v23 = vpop.eup %1077 }
 0x482   :  { %v351_v24 = vsel %vm261_vm3, %v1078_v23, 0.0 }
 0x483   :  { %352 = vadd.xlane.f32.xlu0 %v351_v24 }
 0x499   :  { %211 = vrot.lane.b32.xlu0 %v1291_v57, %s1218_s4 }
 0x49d   :  { %576 = vrot.lane.b32.xlu0 %v1291_v57, %s1222_s8 }
 0x508   :  { %v350_v25 = vpop.xlane.xlu0 %349 }
 0x509   :  { %1079 = vrcp.f32 %v350_v25 }
 0x50c   :  { %v353_v27 = vpop.xlane.xlu0 %352 }
 0x50d   :  { %1081 = vrcp.f32 %v353_v27 }
 0x510   :  { %v212_v29 = vpop.permute.xlu0 %211 }
 0x511   :  { %v218_v30 = vsel %vm213_vm2, %v212_v29, 0 }
 0x512   :  { %972 = vmatpush3.bf16.xpose.msra.mxu1 %v218_v30 }
 0x513   :  { %983 = vmatprep.subr.bf16.mxu1 %v1214_v52 }
 0x514   :  { %v577_v39 = vpop.permute.xlu0 %576 }
 0x515   :  { %v582_v41 = vsel %vm213_vm2, %v577_v39, 0 }
 0x516   :  { %v1080_v32 = vpop.eup %1079 }
 0x517   :  { %v356_v35 = vmul.f32 %v1080_v32, %v1076_v21 }
 0x519   :  { %974 = vmatmul.mubr.msk.bf16.vlgmr.msra.gmra.mxu1 %vm213_vm2, %v1291_v57 }
 0x51a   :  { %v1082_v33 = vpop.eup %1081  ;;  %984 = vmatpush3.bf16.msra.mxu1 %v361_v31  ;;  %985 = vmatprep.mubr.msk.bf16.mxu1 %vm1215_vm1, %v1214_v52 }
 0x51b   :  { %995 = vmatprep.subr.bf16.mxu1 %v1214_v52  ;;  %v357_v34 = vmul.f32 %v1082_v33, %v1078_v23 }
 0x51d   :  { %v358_v37 = vpack.c.bf16 %v357_v34, %v356_v35 }
 0x521   :  { %986 = vmatmul.mubr.msk.bf16.vlgmr.msra.gmra.mxu1 %vm261_vm3, %v358_v37 }
 0x522   :  { %996 = vmatpush3.bf16.xpose.msra.mxu1 %v459_v38  ;;  %997 = vmatprep.mubr.msk.bf16.mxu1 %vm1215_vm1, %v1214_v52 }
 0x523   :  { %1007 = vmatprep.subr.bf16.mxu1 %v1214_v52 }
 0x529   :  { %998 = vmatmul.mubr.msk.bf16.vlgmr.msra.gmra.mxu1 %vm213_vm2, %v452_v40 }
 0x52a   :  { %1008 = vmatpush3.bf16.xpose.msra.mxu1 %v582_v41  ;;  %1009 = vmatprep.mubr.msk.bf16.mxu1 %vm1215_vm1, %v1214_v52 }
 0x52b   :  { %1019 = vmatprep.subr.bf16.mxu1 %v1214_v52 }
 0x531   :  { %1010 = vmatmul.mubr.msk.bf16.vlgmr.msra.gmra.mxu1 %vm213_vm2, %v575_v42 }
 0x532   :  { %1023 = vmatprep.mubr.msk.bf16.mxu1 %vm1215_vm1, %v1214_v52 }
 0x5d9   :  { %v254_v43 = vpop.f32.mrf.mxu1 }
 0x5da   :  { %v255_v44 = vadd.f32 %v254_v43, %v1304_v5 }
 0x5db   :  { %v975_v45 = vpop.f32.mrf.mxu1 }
 0x5dc   :  { %v262_v46 = vsel %vm261_vm3, %v255_v44, -inf }
 0x5dd   :  { %263 = vmax.xlane.f32.xlu0 %v262_v46  ;;  %v257_v47 = vpop.f32.mrf.mxu1 }
 0x5de   :  { %v258_v48 = vadd.f32 %v257_v47, %v1307_v9 }
 0x5df   :  { %v976_v49 = vpop.f32.mrf.mxu1 }
 0x5e0   :  { %v265_v50 = vsel %vm261_vm3, %v258_v48, -inf }
 0x5e1   :  { %266 = vmax.xlane.f32.xlu1 %v265_v50  ;;  %v1344_v51 = vpop.f32.mrf.mxu1 }
 0x5e3   :  { %v987_v53 = vpop.f32.mrf.mxu1 }
 0x5e5   :  { %v1346_v54 = vpop.f32.mrf.mxu1 }
 0x5e7   :  { %v988_v55 = vpop.f32.mrf.mxu1 }
 0x5e9   :  { %v495_v56 = vpop.f32.mrf.mxu1 }
 0x5ea   :  { %v496_v57 = vadd.f32 %v495_v56, %v1304_v5 }
 0x5eb   :  { %v999_v58 = vpop.f32.mrf.mxu1 }
 0x5ec   :  { %v502_v59 = vsel %vm261_vm3, %v496_v57, -inf }
 0x5ed   :  { %503 = vmax.xlane.f32.xlu0 %v502_v59  ;;  %v498_v60 = vpop.f32.mrf.mxu1 }
 0x5ee   :  { %v499_v61 = vadd.f32 %v498_v60, %v1307_v9 }
 0x5ef   :  { %v1000_v62 = vpop.f32.mrf.mxu1 }
 0x5f0   :  { %v505_v63 = vsel %vm261_vm3, %v499_v61, -inf }
 0x5f1   :  { %506 = vmax.xlane.f32.xlu0 %v505_v63  ;;  %v618_v2 = vpop.f32.mrf.mxu1 }
 0x5f2   :  { %v619_v4 = vadd.f32 %v618_v2, %v1304_v5 }
 0x5f3   :  { %v1011_v6 = vpop.f32.mrf.mxu1 }
 0x5f4   :  { %v625_v7 = vsel %vm261_vm3, %v619_v4, -inf }
 0x5f5   :  { %626 = vmax.xlane.f32.xlu0 %v625_v7  ;;  %v621_v8 = vpop.f32.mrf.mxu1 }
 0x5f6   :  { %v622_v10 = vadd.f32 %v621_v8, %v1307_v9 }
 0x5f7   :  { %v1012_v11 = vpop.f32.mrf.mxu1 }
 0x5f8   :  { %v628_v12 = vsel %vm261_vm3, %v622_v10, -inf }
 0x5f9   :  { %629 = vmax.xlane.f32.xlu1 %v628_v12 }
 0x666   :  { %v264_v13 = vpop.xlane.xlu0 %263 }
 0x667   :  { %v268_v14 = vsub.f32 %v255_v44, %v264_v13 }
 0x669   :  { %v270_v15 = vmul.f32 1.442695, %v268_v14 }
 0x66a   :  { %v267_v16 = vpop.xlane.xlu1 %266 }
 0x66b   :  { %1083 = vpow2.f32 %v270_v15  ;;  %v269_v17 = vsub.f32 %v258_v48, %v267_v16 }
 0x66d   :  { %v272_v18 = vmul.f32 1.442695, %v269_v17  ;;  %v701_v17 = vsub.s32 2, %v1272_v26 }
 0x66f   :  { %1085 = vpow2.f32 %v272_v18 }
 0x676   :  { %v504_v5 = vpop.xlane.xlu0 %503 }
 0x677   :  { %v508_v19 = vsub.f32 %v496_v57, %v504_v5 }
 0x678   :  { %v1084_v20 = vpop.eup %1083 }
 0x679   :  { %v510_v21 = vmul.f32 1.442695, %v508_v19  ;;  %v274_v22 = vsel %vm261_vm3, %v1084_v20, 0.0 }
 0x67a   :  { %v507_v23 = vpop.xlane.xlu0 %506  ;;  %275 = vadd.xlane.f32.xlu0 %v274_v22  ;;  %v702_v22 = vrot.slane %v1275_v28, %v701_v17 }
 0x67b   :  { %1087 = vpow2.f32 %v510_v21  ;;  %v509_v9 = vsub.f32 %v499_v61, %v507_v23 }
 0x67c   :  { %v1086_v24 = vpop.eup %1085 }
 0x67d   :  { %v512_v25 = vmul.f32 1.442695, %v509_v9  ;;  %v277_v27 = vsel %vm261_vm3, %v1086_v24, 0.0 }
 0x67e   :  { %v627_v29 = vpop.xlane.xlu0 %626  ;;  %278 = vadd.xlane.f32.xlu1 %v277_v27 }
 0x67f   :  { %1089 = vpow2.f32 %v512_v25  ;;  %v631_v30 = vsub.f32 %v619_v4, %v627_v29 }
 0x681   :  { %v633_v31 = vmul.f32 1.442695, %v631_v30 }
 0x682   :  { %v630_v32 = vpop.xlane.xlu1 %629 }
 0x683   :  { %1091 = vpow2.f32 %v633_v31  ;;  %v632_v33 = vsub.f32 %v622_v10, %v630_v32 }
 0x685   :  { %v635_v34 = vmul.f32 1.442695, %v632_v33 }
 0x687   :  { %1093 = vpow2.f32 %v635_v34 }
 0x688   :  { %v1088_v35 = vpop.eup %1087 }
 0x689   :  { %v514_v36 = vsel %vm261_vm3, %v1088_v35, 0.0 }
 0x68a   :  { %515 = vadd.xlane.f32.xlu0 %v514_v36 }
 0x68c   :  { %v1090_v37 = vpop.eup %1089 }
 0x68d   :  { %v517_v38 = vsel %vm261_vm3, %v1090_v37, 0.0 }
 0x68e   :  { %518 = vadd.xlane.f32.xlu1 %v517_v38 }
 0x690   :  { %v1092_v39 = vpop.eup %1091 }
 0x691   :  { %v637_v40 = vsel %vm261_vm3, %v1092_v39, 0.0 }
 0x692   :  { %638 = vadd.xlane.f32.xlu0 %v637_v40 }
 0x694   :  { %v1094_v41 = vpop.eup %1093 }
 0x695   :  { %v640_v42 = vsel %vm261_vm3, %v1094_v41, 0.0 }
 0x696   :  { %641 = vadd.xlane.f32.xlu1 %v640_v42  ;;  %v1066_v42 = vld [vmem:[#allocation7 + $0x20] ss:$8 sps:$4 sm:$0xff]  }
 0x6a7   :  { %648 = vrot.lane.b32.xlu1 %v1297_v3, %s1223_s9 }
 0x6a8   :  { %525 = vrot.lane.b32.xlu0 %v1297_v3, %s1213_s0 }
 0x703   :  { %v276_v43 = vpop.xlane.xlu0 %275 }
 0x704   :  { %1095 = vrcp.f32 %v276_v43 }
 0x707   :  { %v279_v44 = vpop.xlane.xlu1 %278 }
 0x708   :  { %1097 = vrcp.f32 %v279_v44 }
 0x711   :  { %v1096_v45 = vpop.eup %1095 }
 0x712   :  { %v282_v48 = vmul.f32 %v1096_v45, %v1084_v20 }
 0x713   :  { %v516_v46 = vpop.xlane.xlu0 %515 }
 0x714   :  { %1099 = vrcp.f32 %v516_v46 }
 0x715   :  { %v1098_v47 = vpop.eup %1097 }
 0x716   :  { %v283_v49 = vmul.f32 %v1098_v47, %v1086_v24 }
 0x717   :  { %v519_v50 = vpop.xlane.xlu1 %518 }
 0x718   :  { %1101 = vrcp.f32 %v519_v50  ;;  %v284_v53 = vpack.c.bf16 %v283_v49, %v282_v48  ;;  %v733_v49 = vsub.s32 6, %v1272_v26 }
 0x71a   :  { %992 = vmatmul.mubr.msk.bf16.vlgmr.msra.gmra.mxu0 %vm261_vm3, %v284_v53 }
 0x71b   :  { %v639_v55 = vpop.xlane.xlu0 %638  ;;  %1003 = vmatprep.mubr.msk.bf16.mxu0 %vm1215_vm1, %v1214_v52 }
 0x71c   :  { %1103 = vrcp.f32 %v639_v55  ;;  %v734_v55 = vrot.slane %v1275_v28, %v733_v49 }
 0x71f   :  { %v526_v3 = vpop.permute.xlu0 %525  ;;  %v642_v56 = vpop.xlane.xlu1 %641 }
 0x720   :  { %1105 = vrcp.f32 %v642_v56  ;;  %1002 = vmatpush3.bf16.msra.mxu0 %v526_v3  ;;  %v739_v3 = vsub.s32 7, %v1272_v26 }
 0x721   :  { %1013 = vmatprep.subr.bf16.mxu0 %v1214_v52  ;;  %v1100_v57 = vpop.eup %1099 }
 0x722   :  { %v522_v59 = vmul.f32 %v1100_v57, %v1088_v35 }
 0x723   :  { %v649_v62 = vpop.permute.xlu1 %648 }
 0x725   :  { %v1102_v58 = vpop.eup %1101 }
 0x726   :  { %v523_v60 = vmul.f32 %v1102_v58, %v1090_v37 }
 0x728   :  { %v524_v61 = vpack.c.bf16 %v523_v60, %v522_v59  ;;  %v740_v59 = vrot.slane %v1275_v28, %v739_v3 }
 0x729   :  { %v1104_v63 = vpop.eup %1103 }
 0x72a   :  { %1004 = vmatmul.mubr.msk.bf16.vlgmr.msra.gmra.mxu0 %vm261_vm3, %v524_v61  ;;  %v645_v4 = vmul.f32 %v1104_v63, %v1092_v39 }
 0x72b   :  { %1014 = vmatpush3.bf16.msra.mxu0 %v649_v62  ;;  %1015 = vmatprep.mubr.msk.bf16.mxu0 %vm1215_vm1, %v1214_v52 }
 0x72c   :  { %1027 = vmatprep.subr.bf16.mxu0 %v1214_v52 }
 0x72d   :  { %v1106_v2 = vpop.eup %1105 }
 0x72e   :  { %v646_v6 = vmul.f32 %v1106_v2, %v1094_v41  ;;  %v1065_v41 = vld [vmem:[#allocation7 + $0x30] ss:$8 sps:$4 sm:$0xff]  }
 0x72f   :  { %1020 = vmatpush3.bf16.msra.mxu1 %v1065_v41  ;;  %v1067_v2 = vld [vmem:[#allocation7 + $0x70] ss:$8 sps:$4 sm:$0xff]  }
 0x730   :  { %v647_v7 = vpack.c.bf16 %v646_v6, %v645_v4  ;;  %1021 = vmatprep.subr.bf16.mxu1 %v1214_v52  ;;  %v1068_v4 = vld [vmem:[#allocation7 + $0x60] ss:$8 sps:$4 sm:$0xff]   ;;  %v1069_v6 = vld [vmem:[#allocation7 + $0x50] ss:$8 sps:$4 sm:$0xff]  }
 0x732   :  { %1016 = vmatmul.mubr.msk.bf16.vlgmr.msra.gmra.mxu0 %vm261_vm3, %v647_v7  ;;  %v746_v7 = vsub.s32 1, %v1272_v26 }
 0x733   :  { %1035 = vmatprep.mubr.msk.bf16.mxu0 %vm1215_vm1, %v1214_v52  ;;  %1022 = vmatpush3.bf16.msra.mxu1 %v1066_v42 }
 0x734   :  { %1028 = vmatpush3.bf16.msra.mxu0 %v1067_v2 }
 0x735   :  { %1029 = vmatprep.subr.bf16.mxu0 %v1214_v52 }
 0x738   :  { %1030 = vmatpush3.bf16.msra.mxu0 %v1068_v4 }
 0x739   :  { %1031 = vmatprep.subr.bf16.mxu0 %v1214_v52 }
 0x73c   :  { %1032 = vmatpush3.bf16.msra.mxu0 %v1069_v6 }
 0x73d   :  { %1033 = vmatprep.subr.bf16.mxu0 %v1214_v52 }
 0x7da   :  { %v444_v8 = vpop.f32.mrf.mxu0 }
 0x7db   :  { %v445_v16 = vadd.f32 %v444_v8, %v1344_v51  ;;  %v1070_v8 = vld [vmem:[#allocation7 + $0x40] ss:$8 sps:$4 sm:$0xff]  }
 0x7dc   :  { %v993_v10 = vpop.f32.mrf.mxu0  ;;  %1034 = vmatpush3.bf16.msra.mxu0 %v1070_v8 }
 0x7dd   :  { %v747_v10 = vrot.slane %v1275_v28, %v746_v7 }
 0x7de   :  { %v447_v11 = vpop.f32.mrf.mxu0 }
 0x7df   :  { %v448_v20 = vadd.f32 %v447_v11, %v1346_v54 }
 0x7e0   :  { %v994_v12 = vpop.f32.mrf.mxu0 }
 0x7ea   :  { %v565_v13 = vpop.f32.mrf.mxu0 }
 0x7eb   :  { %v572_v5 = vadd.f32 %v565_v13, %v445_v16 }
 0x7ec   :  { %v1005_v14 = vpop.f32.mrf.mxu0 }
 0x7ee   :  { %v568_v15 = vpop.f32.mrf.mxu0 }
 0x7ef   :  { %v573_v9 = vadd.f32 %v568_v15, %v448_v20 }
 0x7f0   :  { %v1006_v18 = vpop.f32.mrf.mxu0 }
 0x7f2   :  { %v688_v19 = vpop.f32.mrf.mxu0 }
 0x7f3   :  { %v695_v21 = vadd.f32 %v688_v19, %v572_v5 }
 0x7f4   :  { %v1017_v23 = vpop.f32.mrf.mxu0 }
 0x7f5   :  { %v697_v24 = vadd.f32 %v695_v21, %v1260_v0 }
 0x7f6   :  { %v691_v25 = vpop.f32.mrf.mxu0 }
 0x7f7   :  { %v1381_v27 = vadd.f32 %v702_v22, %v697_v24  ;;  %v696_v29 = vadd.f32 %v691_v25, %v573_v9 }
 0x7f8   :  { %v1018_v30 = vpop.f32.mrf.mxu0 }
 0x7f9   :  { %v698_v51 = vadd.f32 %v696_v29, %v1262_v1  ;;  %v705_v31 = vsel %vm81_vm0, %v1381_v27, 0.0 }
 0x7fa   :  { %706 = vadd.xlane.f32.xlu1 %v705_v31  ;;  %v831_v31 = vsub.s32 3, %v1272_v26 }
 0x7fb   :  { %v1386_v32 = vadd.f32 %v702_v22, %v698_v51 }
 0x7fd   :  { %v708_v54 = vsel %vm81_vm0, %v1386_v32, 0.0 }
 0x7fe   :  { %709 = vadd.xlane.f32.xlu0 %v708_v54  ;;  %v832_v54 = vrot.slane %v1275_v28, %v831_v31 }
 0x883   :  { %v707_v33 = vpop.xlane.xlu1 %706 }
 0x884   :  { %v711_v34 = vmul.f32 0.03125, %v707_v33 }
 0x886   :  { %v713_v0 = vsub.f32 %v1381_v27, %v711_v34 }
 0x887   :  { %v710_v35 = vpop.xlane.xlu0 %709 }
 0x888   :  { %v712_v36 = vmul.f32 0.03125, %v710_v35  ;;  %v715_v37 = vmul.f32 %v713_v0, %v713_v0 }
 0x88a   :  { %v714_v38 = vsub.f32 %v1386_v32, %v712_v36  ;;  %v717_v1 = vsel %vm81_vm0, %v715_v37, 0.0 }
 0x88b   :  { %718 = vadd.xlane.f32.xlu0 %v717_v1 }
 0x88c   :  { %v716_v39 = vmul.f32 %v714_v38, %v714_v38 }
 0x88e   :  { %v720_v40 = vsel %vm81_vm0, %v716_v39, 0.0 }
 0x88f   :  { %721 = vadd.xlane.f32.xlu1 %v720_v40 }
 0x914   :  { %v719_v43 = vpop.xlane.xlu0 %718 }
 0x915   :  { %v723_v44 = vmul.f32 0.03125, %v719_v43 }
 0x917   :  { %v725_v45 = vadd.f32 1e-05, %v723_v44 }
 0x918   :  { %v722_v46 = vpop.xlane.xlu1 %721 }
 0x919   :  { %1107 = vrsqrt.f32 %v725_v45  ;;  %v724_v47 = vmul.f32 0.03125, %v722_v46 }
 0x91b   :  { %v726_v48 = vadd.f32 1e-05, %v724_v47 }
 0x91d   :  { %1109 = vrsqrt.f32 %v726_v48 }
 0x926   :  { %v1108_v50 = vpop.eup %1107 }
 0x927   :  { %v729_v53 = vmul.f32 %v1108_v50, %v713_v0 }
 0x929   :  { %v735_v58 = vmul.f32 %v734_v55, %v729_v53 }
 0x92a   :  { %v1110_v56 = vpop.eup %1109 }
 0x92b   :  { %v730_v57 = vmul.f32 %v1110_v56, %v714_v38  ;;  %v741_v61 = vadd.f32 %v740_v59, %v735_v58 }
 0x92d   :  { %v736_v60 = vmul.f32 %v734_v55, %v730_v57 }
 0x92f   :  { %v742_v62 = vadd.f32 %v740_v59, %v736_v60 }
 0x931   :  { %v743_v63 = vpack.c.bf16 %v742_v62, %v741_v61 }
 0x933   :  { %1024 = vmatmul.mubr.msk.bf16.vlgmr.msra.gmra.mxu1 %vm81_vm0, %v743_v63 }
 0x9f3   :  { %v797_v11 = vpop.f32.mrf.mxu1 }
 0x9f4   :  { %v798_v12 = vadd.f32 %v797_v11, %v747_v10 }
 0x9f5   :  { %v1025_v13 = vpop.f32.mrf.mxu1 }
 0x9f6   :  { %820 = vrot.lane.b32.xlu0 %v798_v12, %s1213_s0  ;;  %v940_v17 = vmul.f32 -1.442695, %v798_v12 }
 0x9f7   :  { %v800_v14 = vpop.f32.mrf.mxu1 }
 0x9f8   :  { %v801_v15 = vadd.f32 %v800_v14, %v747_v10  ;;  %1111 = vpow2.f32 %v940_v17 }
 0x9f9   :  { %v1026_v16 = vpop.f32.mrf.mxu1 }
 0x9fa   :  { %822 = vrot.lane.b32.xlu1 %v801_v15, %s1213_s0  ;;  %v941_v18 = vmul.f32 -1.442695, %v801_v15 }
 0x9fc   :  { %1113 = vpow2.f32 %v941_v18 }
 0xa05   :  { %v1112_v5 = vpop.eup %1111 }
 0xa06   :  { %v810_v19 = vadd.f32 1.0, %v1112_v5 }
 0xa08   :  { %1115 = vrcp.f32 %v810_v19 }
 0xa09   :  { %v1114_v52 = vpop.eup %1113 }
 0xa0a   :  { %v811_v20 = vadd.f32 1.0, %v1114_v52 }
 0xa0c   :  { %1117 = vrcp.f32 %v811_v20 }
 0xa15   :  { %v1116_v21 = vpop.eup %1115 }
 0xa16   :  { %v816_v9 = vmul.f32 %v1116_v21, %v798_v12 }
 0xa19   :  { %v1118_v22 = vpop.eup %1117 }
 0xa1a   :  { %v817_v24 = vmul.f32 %v1118_v22, %v801_v15 }
 0xa68   :  { %v821_v23 = vpop.permute.xlu0 %820 }
 0xa69   :  { %v826_v29 = vmul.f32 %v821_v23, %v816_v9 }
 0xa6c   :  { %v823_v25 = vpop.permute.xlu1 %822 }
 0xa6d   :  { %v827_v30 = vmul.f32 %v823_v25, %v817_v24 }
 0xa6f   :  { %v828_v51 = vpack.c.bf16 %v827_v30, %v826_v29 }
 0xa71   :  { %1036 = vmatmul.mubr.msk.bf16.vlgmr.msra.gmra.mxu0 %vm857_vm4, %v828_v51 }
 0xb31   :  { %v895_v33 = vpop.f32.mrf.mxu0 }
 0xb32   :  { %v896_v34 = vadd.f32 %v895_v33, %v832_v54 }
 0xb33   :  { %v1037_v0 = vpop.f32.mrf.mxu0 }
 0xb34   :  { %v902_v35 = vadd.f32 %v896_v34, %v1381_v27 }
 0xb35   :  { %v898_v36 = vpop.f32.mrf.mxu0 }
 0xb36   :  { %904 = vst.msk [vmem:[#allocation8] sm:$0xff] %vm81_vm0, %v902_v35  ;;  %v899_v37 = vadd.f32 %v898_v36, %v832_v54 }
 0xb37   :  { %v1038_v38 = vpop.f32.mrf.mxu0 }
 0xb38   :  { %v903_v1 = vadd.f32 %v899_v37, %v1386_v32 }
 0xb3a   :  { %905 = vst.msk [vmem:[#allocation8 + $0x8] sm:$0xff] %vm81_vm0, %v903_v1 }
 0xb3b   :  { %1190 = shalt.err (!%p1187_p5)
}
 0xb3c   :  { %917 = dma.vmem_to_hbm [thread:$0]  %s912_s11, 256, %s1422_s3, [#allocation4], %s1209_s22, %s1209_s22, %s1210_s23  }
 0xb3d   :  { %1203 = dma.done.wait [#allocation4], 256  }
 0xb3e   :  { %1204 = vsyncadd [#allocation4], 4294967040 }
 0xb3f   :  { %921 = vsyncpa [#allocation3], 1 }
 0xb40   :  { %922 = vsyncpa [#allocation6], 1 }
 0xb41   :  { %923 = vsyncpa [#allocation4], 1 }

</bundles_post_ra>
